<compile_context>
chip_gen: v7x
topology: tpu7x:2x2x1
jax: 0.10.0
libtpu: 0.0.40
codegen_flags: <defaults>
</compile_context>

<pallas_src>
import jax
import jax.numpy as jnp
from jax.experimental import pallas as pl
from jax.experimental.pallas import tpu as pltpu

NUM_INPUTS = 200
NUM_HIDDENS = 256
NUM_OUTPUTS = 1
MAX_TILE_B = 2048   # ~1.6 MiB x-block (f32); x2 double-buffer + h scratch << VMEM


def _cdiv(a, b):
    return -(-a // b)


def _round_up(n, m):
    return _cdiv(n, m) * m


def _fnn_kernel(x_ref, w1_ref, b1_ref, w2_ref, b2_ref, o_ref):
    # x_ref : (tile_b, 200) f32     w1_ref: (200, 256) bf16
    # b1_ref: (1, 256) f32          w2_ref: (256, 1) bf16
    # b2_ref: (1, 1) f32 in SMEM    o_ref : (tile_b, 1) f32
    x = x_ref[...].astype(jnp.bfloat16)                       # fused f32->bf16 cast (VPU)
    h = jnp.dot(x, w1_ref[...], preferred_element_type=jnp.float32)   # MXU, K=200, f32 acc
    h = jnp.maximum(h + b1_ref[...], 0.0)                     # bias + ReLU (VPU, f32)
    h = h.astype(jnp.bfloat16)                                 # halve epilogue traffic
    # Second layer (N=1) also on the MXU (idle anyway); f32 accumulation.
    z = jnp.dot(h, w2_ref[...], preferred_element_type=jnp.float32) + b2_ref[0, 0]
    # Logistic: exp + approx reciprocal both land on the EUP slot.
    o_ref[...] = pl.reciprocal(1.0 + jnp.exp(-z), approx=True)


def my_two_net_forward(x, w1, b1, w2, b2):
    """x: (B, ...) whose trailing dims flatten to 200 (e.g. NCHW). Returns (B, 1) f32."""
    B = x.shape[0]
    x_flat = x.reshape(B, -1).astype(jnp.float32)      # nn.Flatten (layout-only in XLA)
    assert x_flat.shape[1] == NUM_INPUTS

    # Tile selection: single full-array block for small B (always a legal block
    # shape); otherwise tiles of <= MAX_TILE_B rows with >=2 grid steps so the
    # "parallel" batch axis can shard across v7x's two TensorCores. The last
    # (possibly ragged) block is clamped by Pallas — no wrapper-side batch pad.
    if B <= 256:
        tile_b, grid_b = B, 1
    else:
        n_tiles = max(2, _cdiv(B, MAX_TILE_B))
        tile_b = _round_up(_cdiv(B, n_tiles), 16)
        grid_b = _cdiv(B, tile_b)

    # Tiny one-time parameter prep (weights are grid-resident in VMEM).
    w1_bf = w1.astype(jnp.bfloat16)                              # (200, 256)
    b1_2d = b1.reshape(1, NUM_HIDDENS).astype(jnp.float32)       # (1, 256)
    w2_bf = w2.reshape(NUM_HIDDENS, NUM_OUTPUTS).astype(jnp.bfloat16)  # (256, 1)
    b2_2d = b2.reshape(1, 1).astype(jnp.float32)                 # scalar in SMEM

    return pl.pallas_call(
        _fnn_kernel,
        out_shape=jax.ShapeDtypeStruct((B, NUM_OUTPUTS), jnp.float32),
        grid=(grid_b,),
        in_specs=[
            pl.BlockSpec((tile_b, NUM_INPUTS), lambda i: (i, 0)),        # x: tiled, pipelined
            pl.BlockSpec((NUM_INPUTS, NUM_HIDDENS), lambda i: (0, 0)),   # W1: resident
            pl.BlockSpec((1, NUM_HIDDENS), lambda i: (0, 0)),            # b1: resident
            pl.BlockSpec((NUM_HIDDENS, NUM_OUTPUTS), lambda i: (0, 0)),  # W2: resident
            pl.BlockSpec(memory_space=pltpu.MemorySpace.SMEM),           # b2 scalar in SMEM
        ],
        out_specs=pl.BlockSpec((tile_b, NUM_OUTPUTS), lambda i: (i, 0)),
        compiler_params=pltpu.CompilerParams(
            dimension_semantics=("parallel",)),   # independent batch tiles -> megacore
    )(x_flat, w1_bf, b1_2d, w2_bf, b2_2d)


def init_params(key):
    """Deterministic init matching torch.nn.Linear default (U(-1/sqrt(fan_in), +))."""
    k1, k2, k3, k4 = jax.random.split(key, 4)
    bound1 = 1.0 / jnp.sqrt(NUM_INPUTS)
    bound2 = 1.0 / jnp.sqrt(NUM_HIDDENS)
    # Stored already transposed: w1 is (in, hidden), w2 is (hidden, out),
    # equivalent to torch's weight.T used as x @ W.
    w1 = jax.random.uniform(k1, (NUM_INPUTS, NUM_HIDDENS), jnp.float32, -bound1, bound1)
    b1 = jax.random.uniform(k2, (NUM_HIDDENS,), jnp.float32, -bound1, bound1)
    w2 = jax.random.uniform(k3, (NUM_HIDDENS, NUM_OUTPUTS), jnp.float32, -bound2, bound2)
    b2 = jax.random.uniform(k4, (NUM_OUTPUTS,), jnp.float32, -bound2, bound2)
    return w1, b1, w2, b2


def _reference(x, w1, b1, w2, b2):
    x_flat = x.reshape(x.shape[0], -1)
    return jax.nn.sigmoid(jnp.maximum(x_flat @ w1 + b1, 0.0) @ w2 + b2)


if __name__ == "__main__":
    key = jax.random.PRNGKey(0)
    k_params, k_x1, k_x2 = jax.random.split(key, 3)
    w1, b1, w2, b2 = init_params(k_params)

    # Small NCHW input whose flattened feature size is 200: (B=2, C=2, H=10, W=10).
    # Exercises the single full-array-block path.
    x_small = jax.random.normal(k_x1, (2, 2, 10, 10), jnp.float32)
    out_small = jax.block_until_ready(my_two_net_forward(x_small, w1, b1, w2, b2))
    ref_small = _reference(x_small, w1, b1, w2, b2)
    assert out_small.shape == (2, 1)
    assert jnp.allclose(out_small, ref_small, atol=1e-2), "small-batch mismatch vs reference"

    # Larger batch: 2 grid steps (tile_b=304), ragged last block, megacore-friendly.
    x_big = jax.random.normal(k_x2, (600, 2, 10, 10), jnp.float32)
    out_big = jax.block_until_ready(my_two_net_forward(x_big, w1, b1, w2, b2))
    ref_big = _reference(x_big, w1, b1, w2, b2)
    assert out_big.shape == (600, 1)
    assert jnp.allclose(out_big, ref_big, atol=1e-2), "large-batch mismatch vs reference"

    print("KERNEL_OK")
</pallas_src>

<mosaic_0001>
module attributes {stable_mosaic.version = 11 : i64} {
  func.func @_fnn_kernel(%arg0: i32, %arg1: memref<2x200xf32, #tpu.memory_space<vmem>>, %arg2: memref<200x256xbf16, #tpu.memory_space<vmem>>, %arg3: memref<1x256xf32, #tpu.memory_space<vmem>>, %arg4: memref<256x1xbf16, #tpu.memory_space<vmem>>, %arg5: memref<1x1xf32, #tpu.memory_space<smem>>, %arg6: memref<2x1xf32, #tpu.memory_space<vmem>>) attributes {dimension_semantics = [#tpu.dimension_semantics<parallel>], iteration_bounds = array<i64: 1>, scalar_prefetch = 0 : i64, scratch_operands = 0 : i64, tpu.core_type = #tpu.core_type<tc>, window_params = [{transform_indices = @transform_0, window_bounds = array<i64: 2, 200>}, {pipeline_mode = #tpu.pipeline_mode<synchronous>, transform_indices = @transform_1, window_bounds = array<i64: 200, 256>}, {pipeline_mode = #tpu.pipeline_mode<synchronous>, transform_indices = @transform_2, window_bounds = array<i64: 1, 256>}, {pipeline_mode = #tpu.pipeline_mode<synchronous>, transform_indices = @transform_3, window_bounds = array<i64: 256, 1>}, {transform_indices = @transform_4, window_bounds = array<i64: 1, 1>}, {transform_indices = @transform_5, window_bounds = array<i64: 2, 1>}]} {
    %c0 = arith.constant 0 : index
    %c0_0 = arith.constant 0 : index
    %0 = vector.load %arg1[%c0, %c0_0] : memref<2x200xf32, #tpu.memory_space<vmem>>, vector<2x200xf32>
    %1 = arith.truncf %0 : vector<2x200xf32> to vector<2x200xbf16>
    %c0_1 = arith.constant 0 : index
    %c0_2 = arith.constant 0 : index
    %2 = vector.load %arg2[%c0_1, %c0_2] : memref<200x256xbf16, #tpu.memory_space<vmem>>, vector<200x256xbf16>
    %cst = arith.constant dense<0.000000e+00> : vector<2x256xf32>
    %3 = tpu.matmul %1, %2, %cst {dimension_numbers = #tpu.dot_dimension_numbers<[1], [0], [0], [1], [0, 0, 1, 1], [], []>} : vector<2x200xbf16>, vector<200x256xbf16>, vector<2x256xf32> -> vector<2x256xf32>
    %c0_3 = arith.constant 0 : index
    %c0_4 = arith.constant 0 : index
    %4 = vector.load %arg3[%c0_3, %c0_4] : memref<1x256xf32, #tpu.memory_space<vmem>>, vector<1x256xf32>
    %5 = vector.broadcast %4 : vector<1x256xf32> to vector<2x256xf32>
    %6 = arith.addf %3, %5 : vector<2x256xf32>
    %cst_5 = arith.constant 0.000000e+00 : f32
    %7 = vector.broadcast %cst_5 : f32 to vector<2x256xf32>
    %8 = arith.maximumf %6, %7 : vector<2x256xf32>
    %9 = arith.truncf %8 : vector<2x256xf32> to vector<2x256xbf16>
    %c0_6 = arith.constant 0 : index
    %c0_7 = arith.constant 0 : index
    %10 = vector.load %arg4[%c0_6, %c0_7] : memref<256x1xbf16, #tpu.memory_space<vmem>>, vector<256x1xbf16>
    %cst_8 = arith.constant dense<0.000000e+00> : vector<2x1xf32>
    %11 = tpu.matmul %9, %10, %cst_8 {dimension_numbers = #tpu.dot_dimension_numbers<[1], [0], [0], [1], [0, 0, 1, 1], [], []>} : vector<2x256xbf16>, vector<256x1xbf16>, vector<2x1xf32> -> vector<2x1xf32>
    %c0_9 = arith.constant 0 : index
    %c0_10 = arith.constant 0 : index
    %12 = memref.load %arg5[%c0_9, %c0_10] : memref<1x1xf32, #tpu.memory_space<smem>>
    %13 = vector.broadcast %12 : f32 to vector<2x1xf32>
    %14 = arith.addf %11, %13 : vector<2x1xf32>
    %cst_11 = arith.constant 0.000000e+00 : f32
    %15 = vector.broadcast %cst_11 : f32 to vector<2x1xf32>
    %16 = arith.subf %15, %14 : vector<2x1xf32>
    %17 = math.exp %16 : vector<2x1xf32>
    %cst_12 = arith.constant 1.000000e+00 : f32
    %18 = vector.broadcast %cst_12 : f32 to vector<2x1xf32>
    %19 = arith.addf %18, %17 : vector<2x1xf32>
    %20 = tpu.reciprocal %19 {approx = true} : vector<2x1xf32> -> vector<2x1xf32>
    %c0_13 = arith.constant 0 : index
    %c0_14 = arith.constant 0 : index
    %21 = vector.load %arg6[%c0_13, %c0_14] : memref<2x1xf32, #tpu.memory_space<vmem>>, vector<2x1xf32>
    tpu.vector_store %arg6[%c0_13, %c0_14], %20 {strides = array<i32>} : memref<2x1xf32, #tpu.memory_space<vmem>>, vector<2x1xf32>,
    return
  }
  func.func @transform_0(%arg0: i32) -> (i32, i32) {
    %c0_i32 = arith.constant 0 : i32
    %c0_i32_0 = arith.constant 0 : i32
    return %arg0, %c0_i32 : i32, i32
  }
  func.func @transform_1(%arg0: i32) -> (i32, i32) {
    %c0_i32 = arith.constant 0 : i32
    %c0_i32_0 = arith.constant 0 : i32
    %c0_i32_1 = arith.constant 0 : i32
    return %c0_i32, %c0_i32_0 : i32, i32
  }
  func.func @transform_2(%arg0: i32) -> (i32, i32) {
    %c0_i32 = arith.constant 0 : i32
    %c0_i32_0 = arith.constant 0 : i32
    %c0_i32_1 = arith.constant 0 : i32
    return %c0_i32, %c0_i32_0 : i32, i32
  }
  func.func @transform_3(%arg0: i32) -> (i32, i32) {
    %c0_i32 = arith.constant 0 : i32
    %c0_i32_0 = arith.constant 0 : i32
    %c0_i32_1 = arith.constant 0 : i32
    return %c0_i32, %c0_i32_0 : i32, i32
  }
  func.func @transform_4(%arg0: i32) -> (i32, i32) {
    %c0_i32 = arith.constant 0 : i32
    %c0_i32_0 = arith.constant 0 : i32
    %c0_i32_1 = arith.constant 0 : i32
    return %c0_i32, %c0_i32_0 : i32, i32
  }
  func.func @transform_5(%arg0: i32) -> (i32, i32) {
    %c0_i32 = arith.constant 0 : i32
    %c0_i32_0 = arith.constant 0 : i32
    return %arg0, %c0_i32 : i32, i32
  }
}

</mosaic_0001>

<bundles_post_ra>
// kernel: tpu_custom_call.1
= control target key start
LH: loop header
LB: loop body
LE: loop exit
PB: predicated region body
PF: predicated region fallthrough
CT: control target
= control target key end

     0   :  { %11 = vsyncpa [#allocation4], 0  ;;  %s602_s18 = smov [#allocation3]   ;;  %s713_s0 = inlined_call_operand.vmem [shape: f32[2,200], index: 0, kind: input, shape index: {}]   ;;  %s714_s1 = inlined_call_operand.hbm [shape: bf16[200,256], index: 1, kind: input, shape index: {}]   ;;  %s715_s2 = inlined_call_operand.vmem [shape: f32[1,256], index: 2, kind: input, shape index: {}]   ;;  %s716_s3 = inlined_call_operand.vmem [shape: bf16[256,1], index: 3, kind: input, shape index: {}]   ;;  %s717_s4 = inlined_call_operand.<no memory space> [shape: f32[1,1], index: 4, kind: input, shape index: {}]   ;;  %s718_s5 = inlined_call_operand.vmem [shape: f32[2,1], index: 5, kind: output, shape index: {}]  }
   0x1   :  { %s19_s19 = sshll.u32 %s602_s18, 4  ;;  %s578_s22 = scalar_lea.hbm %s714_s1, 3200  ;;  %s20_s19 = int_to_ptr.vmem [resolvable:$true] %s19_s19 }
   0x2   :  { %p579_p0 = scmp.ne.s32.totalorder %s714_s1, %s578_s22  ;;  %p582_p1 = scmp.lt.u32.totalorder %s578_s22, %s714_s1 }
   0x4   :  { %p584_p2 = pnand %p582_p1, %p579_p0 }
   0x6   :  { %587 = shalt.err (!%p584_p2)
}
   0x7   :  { %s588_s27 = scalar_lea.vmem %s20_s19, 3200  ;;  %p593_p4 = scmp.lt.s32.totalorder %s20_s19, %s20_s19 }
   0x8   :  { %p589_p3 = scmp.ne.s32.totalorder %s20_s19, %s588_s27  ;;  %p594_p5 = scmp.lt.s32.totalorder %s588_s27, %s588_s27 }
   0xa   :  { %p595_p6 = por %p594_p5, %p593_p4 }
   0xc   :  { %p596_p7 = pnand %p595_p6, %p589_p3 }
   0xe   :  { %599 = shalt.err (!%p596_p7)
}
   0xf   :  { %s603_s28 = smov 128   ;;  %s604_s29 = smov 8  }
  0x10   :  { %25 = dma.hbm_to_vmem [thread:$0]  %s714_s1, 3200, %s20_s19, [#allocation4], %s603_s28, %s603_s28, %s604_s29  }
  0x11   :  { %600 = dma.done.wait [#allocation4], 3200  }
  0x12   :  { %601 = vsyncadd [#allocation4], 4294964096  ;;  %v520_v0 = vld [vmem:[#allocation3 + $0x4] ss:$8 sps:$4 sm:$0xff]   ;;  %v522_v1 = vld [vmem:[#allocation3] ss:$8 sps:$4 sm:$0xff]   ;;  %v77_v48 = vlaneseq }
  0x13   :  { %223 = vmatprep.subr.bf16.mxu0 %v520_v0  ;;  %v523_v2 = vld [vmem:[#allocation3 + $0x14] ss:$8 sps:$4 sm:$0xff]   ;;  %v525_v3 = vld [vmem:[#allocation3 + $0x10] ss:$8 sps:$4 sm:$0xff]   ;;  %v526_v4 = vld [vmem:[#allocation3 + $0x24] ss:$8 sps:$4 sm:$0xff]  }
  0x14   :  { %224 = vmatpush1.bf16.msra.mxu0 %v522_v1  ;;  %v528_v5 = vld [vmem:[#allocation3 + $0x20] ss:$8 sps:$4 sm:$0xff]   ;;  %v529_v6 = vld [vmem:[#allocation3 + $0x34] ss:$8 sps:$4 sm:$0xff]   ;;  %v531_v7 = vld [vmem:[#allocation3 + $0x30] ss:$8 sps:$4 sm:$0xff]  }
  0x15   :  { %225 = vmatprep.subr.bf16.mxu0 %v523_v2  ;;  %v532_v8 = vld [vmem:[#allocation3 + $0x44] ss:$8 sps:$4 sm:$0xff]   ;;  %v534_v9 = vld [vmem:[#allocation3 + $0x40] ss:$8 sps:$4 sm:$0xff]   ;;  %v535_v10 = vld [vmem:[#allocation3 + $0x54] ss:$8 sps:$4 sm:$0xff]   ;;  %v301_v2 = vstv %s717_s4 }
  0x16   :  { %v650_v11 = vld.sshfl [vmem:[%s713_s0] sm:$0x33 pattern:$0x76325410]  ;;  %v537_v13 = vld [vmem:[#allocation3 + $0x50] ss:$8 sps:$4 sm:$0xff]  }
  0x17   :  { %v558_v12 = vld [vmem:[%s716_s3 + $0x40] sm:$0xff]   ;;  %v45_v14 = vcombine.high %v650_v11, %v650_v11  ;;  %vm212_vm0 = vcmask 588800   ;;  %v560_v18 = vld [vmem:[%s716_s3 + $0x48] sm:$0xff]   ;;  %v562_v20 = vld [vmem:[%s716_s3 + $0x50] sm:$0xff]   ;;  %vm216_vm1 = vcmask 1043456   ;;  %v48_v43 = vpack.c.bf16 %v650_v11, %v650_v11 }
  0x18   :  { %226 = vmatpush1.bf16.msra.mxu0 %v525_v3  ;;  %v538_v15 = vld [vmem:[#allocation3 + $0x64] ss:$8 sps:$4 sm:$0xff]   ;;  %495 = vmatprep.subr.bf16.mxu1 %v558_v12  ;;  %v540_v21 = vld [vmem:[#allocation3 + $0x60] ss:$8 sps:$4 sm:$0xff]   ;;  %v541_v22 = vld [vmem:[#allocation3 + $0x74] ss:$8 sps:$4 sm:$0xff]  }
  0x19   :  { %227 = vmatprep.subr.bf16.mxu0 %v526_v4  ;;  %v559_v16 = vld [vmem:[%s716_s3] sm:$0xff]   ;;  %v49_v17 = vpack.c.bf16 %v45_v14, %v45_v14  ;;  %v561_v19 = vld [vmem:[%s716_s3 + $0x8] sm:$0xff]   ;;  %v563_v23 = vld [vmem:[%s716_s3 + $0x10] sm:$0xff]   ;;  %v78_v49 = vshrl.u32 %v77_v48, 7  ;;  %vm443_vm2 = vcmask 1024  }
  0x1a   :  { %496 = vmatpush3.bf16.msra.mxu1 %v559_v16  ;;  %v564_v24 = vld [vmem:[%s716_s3 + $0x58] sm:$0xff]   ;;  %v544_v26 = vld [vmem:[#allocation3 + $0x84] ss:$8 sps:$4 sm:$0xff]   ;;  %v546_v29 = vld [vmem:[#allocation3 + $0x80] ss:$8 sps:$4 sm:$0xff]  }
  0x1b   :  { %478 = vmatprep.mubr.msk.bf16.mxu0 %vm212_vm0, %v49_v17  ;;  %497 = vmatprep.subr.bf16.mxu1 %v560_v18  ;;  %v543_v25 = vld [vmem:[#allocation3 + $0x70] ss:$8 sps:$4 sm:$0xff]   ;;  %v566_v28 = vld [vmem:[%s716_s3 + $0x60] sm:$0xff]   ;;  %v547_v30 = vld [vmem:[#allocation3 + $0x94] ss:$8 sps:$4 sm:$0xff]   ;;  %v79_v50 = vsub.s32 0, %v78_v49 }
  0x1c   :  { %228 = vmatpush1.bf16.msra.mxu0 %v528_v5  ;;  %v565_v27 = vld [vmem:[%s716_s3 + $0x18] sm:$0xff]   ;;  %v567_v31 = vld [vmem:[%s716_s3 + $0x20] sm:$0xff]   ;;  %v568_v32 = vld [vmem:[%s716_s3 + $0x68] sm:$0xff]   ;;  %v83_v52 = vsub.s32 1, %v78_v49 }
  0x1d   :  { %229 = vmatprep.subr.bf16.mxu0 %v529_v6  ;;  %v549_v33 = vld [vmem:[#allocation3 + $0x90] ss:$8 sps:$4 sm:$0xff]   ;;  %v550_v34 = vld [vmem:[#allocation3 + $0xa4] ss:$8 sps:$4 sm:$0xff]   ;;  %v552_v36 = vld [vmem:[#allocation3 + $0xa0] ss:$8 sps:$4 sm:$0xff]  }
  0x1e   :  { %498 = vmatpush3.bf16.msra.mxu1 %v561_v19  ;;  %v569_v35 = vld [vmem:[%s716_s3 + $0x28] sm:$0xff]   ;;  %v553_v37 = vld [vmem:[#allocation3 + $0xb4] ss:$8 sps:$4 sm:$0xff]   ;;  %v74_v38 = vld [vmem:[#allocation3 + $0xc0] sm:$0xff] }
  0x1f   :  { %499 = vmatprep.subr.bf16.mxu1 %v562_v20  ;;  %v555_v39 = vld [vmem:[#allocation3 + $0xb0] ss:$8 sps:$4 sm:$0xff]   ;;  %v476_v40 = vcombine.high %v74_v38, %v74_v38  ;;  %v475_v41 = vcombine.low %v74_v38, %v74_v38  ;;  %v75_v51 = vld [vmem:[%s715_s2] sm:$0x3] }
  0x20   :  { %230 = vmatpush1.bf16.msra.mxu0 %v531_v7  ;;  %v570_v44 = vld [vmem:[%s716_s3 + $0x70] sm:$0xff]   ;;  %v572_v46 = vld [vmem:[%s716_s3 + $0x78] sm:$0xff]   ;;  %v80_v53 = vrot.slane %v75_v51, %v79_v50  ;;  %v84_v54 = vrot.slane %v75_v51, %v83_v52 }
  0x21   :  { %231 = vmatprep.subr.bf16.mxu0 %v532_v8  ;;  %v218_v42 = vsel %vm216_vm1, %v475_v41, 0  ;;  %v571_v45 = vld [vmem:[%s716_s3 + $0x30] sm:$0xff]   ;;  %v573_v47 = vld [vmem:[%s716_s3 + $0x38] sm:$0xff]  }
  0x22   :  { %500 = vmatpush3.bf16.msra.mxu1 %v563_v23 }
  0x23   :  { %501 = vmatprep.subr.bf16.mxu1 %v564_v24 }
  0x24   :  { %232 = vmatpush1.bf16.msra.mxu0 %v534_v9 }
  0x25   :  { %233 = vmatprep.subr.bf16.mxu0 %v535_v10 }
  0x26   :  { %502 = vmatpush3.bf16.msra.mxu1 %v565_v27 }
  0x27   :  { %503 = vmatprep.subr.bf16.mxu1 %v566_v28 }
  0x28   :  { %234 = vmatpush1.bf16.msra.mxu0 %v537_v13 }
  0x29   :  { %235 = vmatprep.subr.bf16.mxu0 %v538_v15 }
  0x2a   :  { %504 = vmatpush3.bf16.msra.mxu1 %v567_v31 }
  0x2b   :  { %505 = vmatprep.subr.bf16.mxu1 %v568_v32 }
  0x2c   :  { %236 = vmatpush1.bf16.msra.mxu0 %v540_v21 }
  0x2d   :  { %237 = vmatprep.subr.bf16.mxu0 %v541_v22 }
  0x2e   :  { %506 = vmatpush3.bf16.msra.mxu1 %v569_v35 }
  0x2f   :  { %507 = vmatprep.subr.bf16.mxu1 %v570_v44 }
  0x30   :  { %238 = vmatpush1.bf16.msra.mxu0 %v543_v25 }
  0x31   :  { %239 = vmatprep.subr.bf16.mxu0 %v544_v26 }
  0x32   :  { %508 = vmatpush3.bf16.msra.mxu1 %v571_v45 }
  0x33   :  { %509 = vmatprep.subr.bf16.mxu1 %v572_v46 }
  0x34   :  { %240 = vmatpush1.bf16.msra.mxu0 %v546_v29 }
  0x35   :  { %241 = vmatprep.subr.bf16.mxu0 %v547_v30 }
  0x36   :  { %510 = vmatpush3.bf16.msra.mxu1 %v573_v47 }
  0x38   :  { %242 = vmatpush1.bf16.msra.mxu0 %v549_v33 }
  0x39   :  { %243 = vmatprep.subr.bf16.mxu0 %v550_v34 }
  0x3c   :  { %244 = vmatpush1.bf16.msra.mxu0 %v552_v36 }
  0x3d   :  { %245 = vmatprep.subr.bf16.mxu0 %v553_v37 }
  0x40   :  { %246 = vmatpush1.bf16.msra.mxu0 %v555_v39 }
  0x41   :  { %477 = vmatprep.subr.msk.bf16.mxu0 %vm216_vm1, %v476_v40 }
  0x44   :  { %248 = vmatpush1.bf16.msra.mxu0 %v218_v42 }
  0x47   :  { %256 = vmatmul.mubr.bf16.vlgmr.msra.gmra.mrb[0].mxu0 %v48_v43 }
 0x11a   :  { %v257_v55 = vpop.f32.mrb[0].mxu0 }
 0x11b   :  { %v258_v56 = vadd.f32 %v257_v55, %v80_v53  ;;  %v259_v57 = vpop.f32.mrb[1].mxu0 }
 0x11c   :  { %v260_v58 = vadd.f32 %v259_v57, %v84_v54  ;;  %v261_v59 = vpop.f32.mrb[2].mxu0 }
 0x11d   :  { %v264_v60 = vmax.f32 %v258_v56, 0.0  ;;  %v262_v61 = vpop.f32.mrb[3].mxu0 }
 0x11e   :  { %v265_v62 = vmax.f32 %v260_v58, 0.0 }
 0x11f   :  { %v266_v0 = vpack.c.bf16 %v264_v60, %v264_v60 }
 0x120   :  { %v267_v63 = vpack.c.bf16 %v265_v62, %v265_v62 }
 0x122   :  { %430 = vmatprep.mubr.bf16.mxu1 %v267_v63 }
 0x123   :  { %431 = vmatmul.mubr.bf16.vlgmr.msra.gmra.mrb[0].mxu1 %v266_v0 }
 0x1f6   :  { %v511_v1 = vpop.f32.mrb[0].mxu1 }
 0x1f7   :  { %v512_v3 = vpop.f32.mrb[1].mxu1 }
 0x1f8   :  { %v513_v4 = vadd.f32 %v512_v3, %v511_v1  ;;  %v514_v5 = vpop.f32.mrb[2].mxu1 }
 0x1f9   :  { %v515_v6 = vpop.f32.mrb[3].mxu1 }
 0x1fa   :  { %v433_v7 = vadd.f32 %v513_v4, %v301_v2 }
 0x1fc   :  { %v438_v8 = vsub.f32 0.0, %v433_v7 }
 0x1fe   :  { %v439_v9 = vmul.f32 1.442695, %v438_v8 }
 0x200   :  { %574 = vpow2.f32 %v439_v9 }
 0x20a   :  { %v575_v10 = vpop.eup %574 }
 0x20b   :  { %v441_v11 = vadd.f32 1.0, %v575_v10 }
 0x20d   :  { %576 = vrcp.f32 %v441_v11 }
 0x217   :  { %v577_v12 = vpop.eup %576 }
 0x218   :  { %444 = vst.msk [vmem:[%s718_s5] sm:$0x3] %vm443_vm2, %v577_v12 }
 0x219   :  { %449 = vsyncpa [#allocation4], 1 }

</bundles_post_ra>
